<compile_context>
chip_gen: v6e
topology: v6e:2x2x1
jax: 0.10.0
libtpu: 0.0.40
codegen_flags: <defaults>
</compile_context>

<pallas_src>
import jax
import jax.numpy as jnp
from jax.experimental import pallas as pl
from jax.experimental.pallas import tpu as pltpu


# --------------------------------- kernels ----------------------------------

def _svc_kernel_small_o(xt_ref, wt_ref, b_ref, out_ref):
    """Transposed, lane-dense kernel for small output_dim.

    xt_ref : (F, TB)  x^T batch-column tile (F on sublanes, TB on lanes)
    wt_ref : (F, O)   resident W^T
    b_ref  : (1, O)   resident bias
    out_ref: (O, TB)  out^T tile (lane-dense store)
    """
    xt = xt_ref[...]                                   # one load, reused for every o
    n_out = out_ref.shape[0]
    rows = []
    for o in range(n_out):                             # output_dim is tiny & static
        w_col = wt_ref[:, o:o + 1]                     # (F, 1) -> lane broadcast (VPU)
        logit = jnp.sum(xt * w_col, axis=0, keepdims=True)  # (1, TB) sublane reduce (XLU)
        rows.append(logit + b_ref[:, o:o + 1])         # bias folded in just before store
    logits = rows[0] if n_out == 1 else jnp.concatenate(rows, axis=0)
    out_ref[...] = jax.nn.sigmoid(logits).astype(out_ref.dtype)  # EUP exp/recip


def _svc_kernel_mxu(x_ref, wt_ref, b_ref, out_ref):
    """Batch-tiled MXU matmul + sigmoid for large output_dim (already lane-dense)."""
    logits = jnp.dot(x_ref[...], wt_ref[...],
                     preferred_element_type=jnp.float32) + b_ref[...]
    out_ref[...] = jax.nn.sigmoid(logits).astype(out_ref.dtype)


# ------------------------------ tile selection -------------------------------

def _round_up(v, m):
    return -(-v // m) * m


def _vmem_limit_bytes():
    """Per-generation scoped VMEM limit: ~3/4 of physical, capped at 96 MiB.

    v5e/v6e: 128 MiB physical -> 96 MiB scoped; v7x: 64 MiB -> 48 MiB scoped.
    Falls back to a v7x-safe 48 MiB if the hardware query is unavailable.
    """
    cap = 64 * 1024 * 1024
    try:
        cap = int(pltpu.get_tpu_info().vmem_capacity_bytes)
    except Exception:
        pass
    return min(cap * 3 // 4, 96 * 1024 * 1024)


_MIN_COLS_PER_STEP = 4096   # >= ~0.5 MiB of x^T HBM traffic per step at F=32
_TARGET_STEPS = 8           # pipelining depth + megacore sharding on v7x


def _pick_batch_tile_transposed(B, F, O, vmem_limit_bytes):
    """Lane width (batch columns) of one grid step for the transposed kernel.

    VMEM per step (double buffered): 2*4*(F_pad + O_pad) bytes per batch column
    (sublane-padded extents), plus tiny resident W^T / bias blocks.
    """
    if B <= 128:
        return B                                        # single full-extent block
    bytes_per_col = 2 * 4 * (_round_up(F, 8) + _round_up(O, 8))
    tb_vmem = int(vmem_limit_bytes * 0.6) // bytes_per_col   # headroom for W/b/scratch
    tb_steps = max(_MIN_COLS_PER_STEP, pl.cdiv(B, _TARGET_STEPS))
    tb = max(128, min(tb_vmem, tb_steps))
    tb = (tb // 128) * 128                              # lane-aligned block width
    return min(tb, B)


# --------------------------------- wrapper -----------------------------------

def svc_forward(x, W, b, *, batch_tile=None):
    """SVCModel.forward: sigmoid(x @ W^T + b).

    x: (B, F) f32, W: (O, F) (nn.Linear layout), b: (O,).  Returns (B, O) f32.
    `batch_tile` optionally overrides the auto-picked tile (multiple of 128 or B).
    """
    x = jnp.asarray(x, jnp.float32)
    W = jnp.asarray(W, jnp.float32)
    b = jnp.asarray(b, jnp.float32)
    B, F = x.shape
    O = W.shape[0]
    vmem_limit = _vmem_limit_bytes()

    # Wrapper-side layout plumbing (free): pre-transposed weights, 2-D bias.
    w_t = W.T.reshape(F, O)                   # (F, O): no in-kernel transposes
    b2 = b.reshape(1, O)                      # (1, O)

    if O >= 128:
        # Large output_dim: output already lane-dense, MXU matmul is worth it.
        # TODO(synk): tile W over O (instead of keeping it resident) for very large output_dim.
        bytes_per_row = 2 * 4 * (_round_up(F, 128) + _round_up(O, 128))
        tb = max(8, min(int(vmem_limit * 0.5) // bytes_per_row,
                        pl.cdiv(B, _TARGET_STEPS)))
        tb = B if tb >= B else max(8, (tb // 8) * 8)
        return pl.pallas_call(
            _svc_kernel_mxu,
            out_shape=jax.ShapeDtypeStruct((B, O), jnp.float32),
            grid=(pl.cdiv(B, tb),),
            in_specs=[pl.BlockSpec((tb, F), lambda i: (i, 0)),
                      pl.BlockSpec((F, O), lambda i: (0, 0)),
                      pl.BlockSpec((1, O), lambda i: (0, 0))],
            out_specs=pl.BlockSpec((tb, O), lambda i: (i, 0)),
            compiler_params=pltpu.CompilerParams(
                dimension_semantics=("parallel",),
                vmem_limit_bytes=vmem_limit),
        )(x, w_t, b2)

    # Small output_dim (SVC default O=1): transposed, lane-dense formulation.
    xt = x.T                                  # (F, B): wrapper-side layout plumbing
    TB = batch_tile if batch_tile is not None else _pick_batch_tile_transposed(
        B, F, O, vmem_limit)

    out_t = pl.pallas_call(
        _svc_kernel_small_o,
        out_shape=jax.ShapeDtypeStruct((O, B), jnp.float32),
        grid=(pl.cdiv(B, TB),),
        in_specs=[
            # Streamed x^T tile: lane-dense loads, no F->128 lane padding.
            # (pipeline_mode=pl.Buffered(3) is a possible further sweep if VMEM allows.)
            pl.BlockSpec((F, TB), lambda i: (0, i)),
            pl.BlockSpec((F, O), lambda i: (0, 0)),   # resident W^T (DMA'd once)
            pl.BlockSpec((1, O), lambda i: (0, 0)),   # resident bias
        ],
        out_specs=pl.BlockSpec((O, TB), lambda i: (0, i)),   # lane-dense out^T
        compiler_params=pltpu.CompilerParams(
            dimension_semantics=("parallel",),        # shard batch steps across TCs (v7x)
            vmem_limit_bytes=vmem_limit),
    )(xt, w_t, b2)
    return out_t.T                            # (B, O); trivial relayout for O=1


# ----------------------------------- main ------------------------------------

if __name__ == "__main__":
    key = jax.random.PRNGKey(0)

    def _check(B, F, O, batch_tile=None, subkey=0):
        k_x, k_w, k_b = jax.random.split(jax.random.fold_in(key, subkey), 3)
        x = jax.random.normal(k_x, (B, F), dtype=jnp.float32)
        W = jax.random.normal(k_w, (O, F), dtype=jnp.float32) * 0.1   # nn.Linear weight (O, F)
        b = jax.random.normal(k_b, (O,), dtype=jnp.float32) * 0.01    # nn.Linear bias (O,)
        out = jax.block_until_ready(svc_forward(x, W, b, batch_tile=batch_tile))
        ref = jax.nn.sigmoid(x @ W.T + b)
        assert out.shape == (B, O)
        assert jnp.allclose(out, ref, atol=1e-5, rtol=1e-5)

    # SVCModel defaults: input_dim=32, output_dim=1, small batch (single full-extent tile).
    _check(B=8, F=32, O=1, subkey=0)
    # Multi-step grid with a partial edge tile (exercises the lane-dense tiled path).
    _check(B=300, F=32, O=1, batch_tile=128, subkey=1)

    print("KERNEL_OK")
</pallas_src>

<mosaic_0001>
module attributes {stable_mosaic.version = 11 : i64} {
  func.func @_svc_kernel_small_o(%arg0: i32, %arg1: memref<32x8xf32, #tpu.memory_space<vmem>>, %arg2: memref<32x1xf32, #tpu.memory_space<vmem>>, %arg3: memref<1x1xf32, #tpu.memory_space<vmem>>, %arg4: memref<1x8xf32, #tpu.memory_space<vmem>>) attributes {dimension_semantics = [#tpu.dimension_semantics<parallel>], iteration_bounds = array<i64: 1>, scalar_prefetch = 0 : i64, scratch_operands = 0 : i64, tpu.core_type = #tpu.core_type<tc>, window_params = [{transform_indices = @transform_0, window_bounds = array<i64: 32, 8>}, {pipeline_mode = #tpu.pipeline_mode<synchronous>, transform_indices = @transform_1, window_bounds = array<i64: 32, 1>}, {pipeline_mode = #tpu.pipeline_mode<synchronous>, transform_indices = @transform_2, window_bounds = array<i64: 1, 1>}, {transform_indices = @transform_3, window_bounds = array<i64: 1, 8>}]} {
    %c0 = arith.constant 0 : index
    %c0_0 = arith.constant 0 : index
    %0 = vector.load %arg1[%c0, %c0_0] : memref<32x8xf32, #tpu.memory_space<vmem>>, vector<32x8xf32>
    %c0_1 = arith.constant 0 : index
    %c0_2 = arith.constant 0 : index
    %1 = vector.load %arg2[%c0_1, %c0_2] : memref<32x1xf32, #tpu.memory_space<vmem>>, vector<32x1xf32>
    %2 = vector.broadcast %1 : vector<32x1xf32> to vector<32x8xf32>
    %3 = arith.mulf %0, %2 : vector<32x8xf32>
    %cst = arith.constant dense<0.000000e+00> : vector<8xf32>
    %4 = vector.multi_reduction <add>, %3, %cst [0] : vector<32x8xf32> to vector<8xf32>
    %5 = vector.shape_cast %4 : vector<8xf32> to vector<1x8xf32>
    %c0_3 = arith.constant 0 : index
    %c0_4 = arith.constant 0 : index
    %6 = vector.load %arg3[%c0_3, %c0_4] : memref<1x1xf32, #tpu.memory_space<vmem>>, vector<1x1xf32>
    %7 = vector.broadcast %6 : vector<1x1xf32> to vector<1x8xf32>
    %8 = arith.addf %5, %7 : vector<1x8xf32>
    %9 = arith.negf %8 : vector<1x8xf32>
    %10 = math.exp %9 : vector<1x8xf32>
    %cst_5 = arith.constant 1.000000e+00 : f32
    %11 = vector.broadcast %cst_5 : f32 to vector<1x8xf32>
    %12 = arith.addf %11, %10 : vector<1x8xf32>
    %13 = arith.divf %11, %12 : vector<1x8xf32>
    %c0_6 = arith.constant 0 : index
    %c0_7 = arith.constant 0 : index
    %14 = vector.load %arg4[%c0_6, %c0_7] : memref<1x8xf32, #tpu.memory_space<vmem>>, vector<1x8xf32>
    tpu.vector_store %arg4[%c0_6, %c0_7], %13 {strides = array<i32>} : memref<1x8xf32, #tpu.memory_space<vmem>>, vector<1x8xf32>,
    return
  }
  func.func @transform_0(%arg0: i32) -> (i32, i32) {
    %c0_i32 = arith.constant 0 : i32
    %c0_i32_0 = arith.constant 0 : i32
    return %c0_i32, %arg0 : i32, i32
  }
  func.func @transform_1(%arg0: i32) -> (i32, i32) {
    %c0_i32 = arith.constant 0 : i32
    %c0_i32_0 = arith.constant 0 : i32
    %c0_i32_1 = arith.constant 0 : i32
    return %c0_i32, %c0_i32_0 : i32, i32
  }
  func.func @transform_2(%arg0: i32) -> (i32, i32) {
    %c0_i32 = arith.constant 0 : i32
    %c0_i32_0 = arith.constant 0 : i32
    %c0_i32_1 = arith.constant 0 : i32
    return %c0_i32, %c0_i32_0 : i32, i32
  }
  func.func @transform_3(%arg0: i32) -> (i32, i32) {
    %c0_i32 = arith.constant 0 : i32
    %c0_i32_0 = arith.constant 0 : i32
    return %c0_i32, %arg0 : i32, i32
  }
}

</mosaic_0001>

<bundles_post_ra>
// kernel: tpu_custom_call.1
= control target key start
LH: loop header
LB: loop body
LE: loop exit
PB: predicated region body
PF: predicated region fallthrough
CT: control target
= control target key end

     0   :  { %s179_s0 = inlined_call_operand.vmem [shape: f32[32,8], index: 0, kind: input, shape index: {}]   ;;  %s180_s1 = inlined_call_operand.vmem [shape: f32[32,1], index: 1, kind: input, shape index: {}]   ;;  %s181_s2 = inlined_call_operand.<no memory space> [shape: f32[1,1], index: 2, kind: input, shape index: {}]   ;;  %s182_s3 = inlined_call_operand.hbm [shape: f32[1,8], index: 3, kind: output, shape index: {}]  }
   0x1   :  { %v8_v0 = vstv %s181_s2 }
   0x2   :  { %9 = vst [vmem:[#allocation2] sm:$0x1] %v8_v0 }
   0x3   :  { %v23_v1 = vld [vmem:[%s180_s1 + $0x10] sm:$0xff]  ;;  %v21_v2 = vld [vmem:[%s180_s1] sm:$0xff]  ;;  %v127_v3 = vmov 0   ;;  %v24_v4 = vld [vmem:[%s180_s1 + $0x18] sm:$0xff] }
   0x4   :  { %100 = vset.pattern.permute.xlu1 %v127_v3  ;;  %99 = vset.pattern.permute.xlu0 %v127_v3  ;;  %v22_v5 = vld [vmem:[%s180_s1 + $0x8] sm:$0xff] }
   0x5   :  { %37 = vperm.xlu1 %100, %v23_v1   ;;  %27 = vperm.xlu0 %99, %v21_v2  }
   0x6   :  { %10 = vsyncpa [#allocation4], 0  ;;  %v17_v9 = vld [vmem:[%s179_s0] sm:$0xff]  ;;  %v19_v10 = vld [vmem:[%s179_s0 + $0x10] sm:$0xff]  ;;  %vm49_vm0 = vcmask 64512   ;;  %v69_v26 = vlaneseq  ;;  %vm80_vm1 = vcmask 57344  }
   0x7   :  { %v18_v11 = vld [vmem:[%s179_s0 + $0x8] sm:$0xff]  ;;  %v20_v14 = vld [vmem:[%s179_s0 + $0x18] sm:$0xff]  ;;  %s128_s0 = smov [#allocation3]  }
   0x8   :  { %v70_v28 = vshrl.u32 %v69_v26, 7  ;;  %s88_s28 = sshll.u32 %s128_s0, 4  ;;  %s89_s28 = int_to_ptr.vmem [resolvable:$true] %s88_s28 }
   0x9   :  { %42 = vperm.xlu1 %100, %v24_v4   ;;  %32 = vperm.xlu0 %99, %v22_v5   ;;  %v63_v6 = vld [vmem:[#allocation2] sm:$0x1]  ;;  %s105_s29 = scalar_lea.vmem %s89_s28, 16  ;;  %s109_s30 = scalar_lea.vmem %s89_s28, 32 }
   0xa   :  { %v71_v31 = vsub.s32 0, %v70_v28  ;;  %p106_p0 = scmp.ne.s32.totalorder %s89_s28, %s105_s29  ;;  %p110_p1 = scmp.lt.s32.totalorder %s89_s28, %s89_s28 }
   0xb   :  { %p111_p2 = scmp.lt.s32.totalorder %s109_s30, %s105_s29 }
   0xd   :  { %66 = vperm.xlu0 %99, %v63_v6   ;;  %p112_p3 = por %p111_p2, %p110_p1 }
   0xf   :  { %p113_p4 = pnand %p112_p3, %p106_p0 }
  0x80   :  { %v38_v7 = vpop.permute.xlu1 %37  ;;  %v28_v8 = vpop.permute.xlu0 %27 }
  0x81   :  { %v45_v12 = vmul.f32 %v28_v8, %v17_v9  ;;  %v47_v16 = vmul.f32 %v38_v7, %v19_v10 }
  0x83   :  { %v50_v18 = vsel %vm49_vm0, %v45_v12, 0.0  ;;  %v53_v22 = vsel %vm49_vm0, %v47_v16, 0.0 }
  0x84   :  { %v43_v13 = vpop.permute.xlu1 %42  ;;  %v33_v15 = vpop.permute.xlu0 %32 }
  0x85   :  { %v46_v17 = vmul.f32 %v33_v15, %v18_v11  ;;  %v48_v19 = vmul.f32 %v43_v13, %v20_v14 }
  0x87   :  { %v51_v20 = vsel %vm49_vm0, %v46_v17, 0.0  ;;  %v55_v24 = vsel %vm49_vm0, %v48_v19, 0.0 }
  0x88   :  { %v52_v21 = vadd.f32 %v51_v20, %v50_v18  ;;  %v67_v33 = vpop.permute.xlu0 %66 }
  0x89   :  { %v72_v36 = vrot.slane %v67_v33, %v71_v31 }
  0x8a   :  { %v54_v23 = vadd.f32 %v53_v22, %v52_v21 }
  0x8c   :  { %v56_v25 = vadd.f32 %v55_v24, %v54_v23 }
  0x8e   :  { %v57_v27 = vrot.slane %v56_v25, 4 }
  0x90   :  { %v58_v29 = vadd.f32 %v57_v27, %v56_v25 }
  0x92   :  { %v59_v30 = vrot.slane %v58_v29, 2 }
  0x94   :  { %v60_v32 = vadd.f32 %v59_v30, %v58_v29 }
  0x96   :  { %v61_v34 = vrot.slane %v60_v32, 1 }
  0x98   :  { %v62_v35 = vadd.f32 %v61_v34, %v60_v32 }
  0x9a   :  { %v73_v37 = vadd.f32 %v72_v36, %v62_v35 }
  0x9c   :  { %v96_v38 = vmul.f32 -1.442695, %v73_v37 }
  0x9e   :  { %101 = vpow2.f32 %v96_v38 }
  0xab   :  { %v102_v39 = vpop.eup %101 }
  0xac   :  { %v77_v40 = vadd.f32 1.0, %v102_v39 }
  0xae   :  { %103 = vrcp.f32 %v77_v40 }
  0xbb   :  { %v104_v41 = vpop.eup %103 }
  0xbc   :  { %81 = vst.msk [vmem:[#allocation3] sm:$0x1] %vm80_vm1, %v104_v41 }
  0xbd   :  { %116 = shalt.err (!%p113_p4)
}
  0xbe   :  { %91 = dma.vmem_to_hbm [thread:$0]  %s89_s28, 16, %s182_s3, [#allocation4]  }
  0xbf   :  { %125 = dma.done.wait [#allocation4], 16  }
  0xc0   :  { %126 = vsyncadd [#allocation4], 4294967280 }
  0xc1   :  { %95 = vsyncpa [#allocation4], 1 }

</bundles_post_ra>
